<compile_context>
chip_gen: v7x
topology: tpu7x:2x2x1
jax: 0.10.0
libtpu: 0.0.40
codegen_flags: <defaults>
</compile_context>

<pallas_src>
import jax
import jax.numpy as jnp
from jax.experimental import pallas as pl
from jax.experimental.pallas import tpu as pltpu

_SMOOTH = 0.0
_EPS = 1e-7
_TILE_R = 8            # sublane tile height
_MAX_LANE = 32768      # lane tile width: 8*32768*4B = 1 MiB f32 per buffer
_PAD_LOGIT = -1e4      # exp(-1e4) underflows to 0 -> padded elems contribute 0


def _uptask_loss_kernel(cls_pred_ref, cls_gt_ref, seg_pred_ref, seg_gt_ref,
                        out_ref, bce_acc, int_acc, card_acc, y_acc):
    k = pl.program_id(1)
    k_last = pl.num_programs(1) - 1

    @pl.when(k == 0)
    def _init():
        bce_acc[...] = jnp.zeros_like(bce_acc)
        int_acc[...] = jnp.zeros_like(int_acc)
        card_acc[...] = jnp.zeros_like(card_acc)
        y_acc[...] = jnp.zeros_like(y_acc)

    x = seg_pred_ref[...].astype(jnp.float32)
    y = seg_gt_ref[...].astype(jnp.float32)

    # One exp per element, reused for the stable BCE term and the sigmoid.
    t = jnp.exp(-jnp.abs(x))
    bce_el = jnp.maximum(x, 0.0) - x * y + jnp.log1p(t)
    # sigmoid(x) = where(x>=0, 1, t) / (1 + t); exact divide keeps dice parity.
    p = jnp.where(x >= 0.0, 1.0, t) / (1.0 + t)

    bce_acc[...] += jnp.sum(bce_el, keepdims=True)
    int_acc[...] += jnp.sum(p * y, keepdims=True)
    card_acc[...] += jnp.sum(p + y, keepdims=True)
    y_acc[...] += jnp.sum(y, keepdims=True)

    @pl.when(k == k_last)
    def _finalize():
        # Tiny classification BCE: cls blocks are resident (constant index map),
        # computed once per parallel slice on the final reduction step.
        xc = cls_pred_ref[...].astype(jnp.float32)
        yc = cls_gt_ref[...].astype(jnp.float32)
        tc = jnp.exp(-jnp.abs(xc))
        cls_sum = jnp.sum(jnp.maximum(xc, 0.0) - xc * yc + jnp.log1p(tc))

        lane = jax.lax.broadcasted_iota(jnp.int32, (8, 128), 1)
        out_ref[...] = jnp.where(
            lane == 0, bce_acc[...],
            jnp.where(lane == 1, int_acc[...],
            jnp.where(lane == 2, card_acc[...],
            jnp.where(lane == 3, y_acc[...],
            jnp.where(lane == 4, cls_sum, 0.0)))))


def _round_up(x, m):
    return ((x + m - 1) // m) * m


def _choose_layout(total):
    """Pick (lane, num_par, num_steps, padded_total) for the seg slab."""
    # Prefer the widest power-of-two lane tile that divides `total` (no pad).
    lane = 0
    cand = _MAX_LANE
    while cand >= 128:
        if total % (_TILE_R * cand) == 0:
            lane = cand
            break
        cand //= 2
    if lane == 0:
        lane = min(_MAX_LANE, _round_up(max(pl.cdiv(total, _TILE_R), 1), 128))

    num_blocks = pl.cdiv(total, _TILE_R * lane)
    exact = (total == num_blocks * _TILE_R * lane)
    if num_blocks >= 2 and (num_blocks % 2 == 0 or not exact):
        num_par = 2          # feed both TensorCores on v7x megacore
    else:
        num_par = 1          # avoid padding a whole extra block just to split
    num_steps = pl.cdiv(num_blocks, num_par)
    padded_total = num_par * num_steps * _TILE_R * lane
    return lane, num_par, num_steps, padded_total


def uptask_loss_train(cls_pred, seg_pred, cls_gt, seg_gt,
                      cls_weight=1.0, seg_weight=1.0):
    """JAX/Pallas equivalent of Uptask_Loss_Train.forward.

    Returns (total_loss, {'CLS_Loss': ..., 'SEG_Loss': ...}) with jnp scalars
    (no .item()/float() host syncs -> safe under jax.jit).
    """
    assert cls_pred.shape == cls_gt.shape
    assert seg_pred.shape == seg_gt.shape
    n_cls = cls_pred.size
    n_seg = seg_pred.size

    lane, num_par, num_steps, padded_total = _choose_layout(n_seg)
    rows = num_par * num_steps * _TILE_R

    # Flatten NCHW -> lane-dense 2-D slab; pad (if needed) with neutral values:
    # logit=-1e4, gt=0 contribute exactly 0 to every accumulated sum.
    flat_pred = seg_pred.reshape(-1)
    flat_gt = seg_gt.reshape(-1)
    pad = padded_total - n_seg
    if pad:
        flat_pred = jnp.pad(flat_pred, (0, pad), constant_values=_PAD_LOGIT)
        flat_gt = jnp.pad(flat_gt, (0, pad), constant_values=0)
    seg_pred_2d = flat_pred.reshape(rows, lane)
    seg_gt_2d = flat_gt.reshape(rows, lane)

    block_bytes = _TILE_R * lane * jnp.dtype(seg_pred_2d.dtype).itemsize
    # 2 seg inputs x 2 pipeline buffers + headroom; well under v7x's 64 MiB.
    vmem_limit = int(min(32 * 1024 * 1024, 4 * block_bytes + (4 << 20)))

    cost = pl.CostEstimate(
        flops=12 * padded_total + 12 * n_cls,
        transcendentals=3 * padded_total + 2 * n_cls,
        bytes_accessed=int(seg_pred_2d.size * seg_pred_2d.dtype.itemsize
                           + seg_gt_2d.size * seg_gt_2d.dtype.itemsize
                           + 2 * n_cls * cls_pred.dtype.itemsize
                           + num_par * 8 * 128 * 4),
    )

    cls_spec = pl.BlockSpec(cls_pred.shape, lambda p, k: (0,) * cls_pred.ndim)
    seg_spec = pl.BlockSpec((_TILE_R, lane),
                            lambda p, k: (p * num_steps + k, 0))
    out_spec = pl.BlockSpec((8, 128), lambda p, k: (p, 0))

    partials = pl.pallas_call(
        _uptask_loss_kernel,
        out_shape=jax.ShapeDtypeStruct((num_par * 8, 128), jnp.float32),
        grid_spec=pltpu.PrefetchScalarGridSpec(
            num_scalar_prefetch=0,
            grid=(num_par, num_steps),
            in_specs=[cls_spec, cls_spec, seg_spec, seg_spec],
            out_specs=out_spec,
            scratch_shapes=[pltpu.VMEM((1, 1), jnp.float32)] * 4,
        ),
        compiler_params=pltpu.CompilerParams(
            dimension_semantics=("parallel", "arbitrary"),
            vmem_limit_bytes=vmem_limit,
        ),
        cost_estimate=cost,
    )(cls_pred, cls_gt, seg_pred_2d, seg_gt_2d)

    # Trivial final scalar math in plain JAX (exact divides).
    parts = partials.reshape(num_par, 8, 128)[:, 0, :]      # (P, 128)
    sums = jnp.sum(parts[:, :4], axis=0)                    # (4,)
    seg_bce_sum, inter, card, y_sum = sums[0], sums[1], sums[2], sums[3]
    cls_sum = parts[0, 4]

    cls_loss = cls_sum / n_cls                               # BCE mean
    seg_bce = seg_bce_sum / n_seg                            # BCE mean
    dice_score = (2.0 * inter + _SMOOTH) / jnp.maximum(card + _SMOOTH, _EPS)
    dice_loss = (1.0 - dice_score) * (y_sum > 0.0).astype(jnp.float32)
    seg_loss = dice_loss + seg_bce                           # weights = 1.0

    loss_cls = cls_weight * cls_loss
    loss_seg = seg_weight * seg_loss
    total = loss_cls + loss_seg
    # NOTE: PyTorch returned .item() floats; returning jnp scalars keeps the
    # wrapper traceable under jit and avoids a device->host sync per step.
    return total, {"CLS_Loss": loss_cls, "SEG_Loss": loss_seg}


if __name__ == "__main__":
    key = jax.random.PRNGKey(0)
    k1, k2, k3, k4 = jax.random.split(key, 4)

    B, C_CLS = 2, 4          # classification head: (batch, num_classes)
    H = W = 16               # segmentation: NCHW (B, 1, H, W)

    cls_pred = jax.random.normal(k1, (B, C_CLS), dtype=jnp.float32)
    cls_gt = (jax.random.uniform(k2, (B, C_CLS)) > 0.5).astype(jnp.float32)
    seg_pred = jax.random.normal(k3, (B, 1, H, W), dtype=jnp.float32)
    seg_gt = (jax.random.uniform(k4, (B, 1, H, W)) > 0.5).astype(jnp.float32)

    def _ref(cp, sp, cg, sg):
        def bce(x, y):
            return jnp.mean(jnp.maximum(x, 0) - x * y + jnp.log1p(jnp.exp(-jnp.abs(x))))
        cls_l = bce(cp, cg)
        p = jax.nn.sigmoid(sp)
        inter = jnp.sum(p * sg)
        card = jnp.sum(p + sg)
        dice = 1.0 - (2.0 * inter) / jnp.maximum(card, _EPS)
        dice = dice * (jnp.sum(sg) > 0)
        seg_l = dice + bce(sp, sg)
        return cls_l + seg_l

    total, parts = uptask_loss_train(cls_pred, seg_pred, cls_gt, seg_gt)
    total = jax.block_until_ready(total)
    assert abs(float(total) - float(_ref(cls_pred, seg_pred, cls_gt, seg_gt))) < 1e-4, (
        float(total), float(_ref(cls_pred, seg_pred, cls_gt, seg_gt)))

    # Second check: exercises a real (parallel x arbitrary) multi-step grid
    # with full-size (8, 32768) tiles and no padding.
    k5, k6 = jax.random.split(k4)
    seg_pred2 = jax.random.normal(k5, (4, 1, 512, 512), dtype=jnp.float32)
    seg_gt2 = (jax.random.uniform(k6, (4, 1, 512, 512)) > 0.5).astype(jnp.float32)
    total2, _ = uptask_loss_train(cls_pred, seg_pred2, cls_gt, seg_gt2)
    total2 = jax.block_until_ready(total2)
    assert abs(float(total2) - float(_ref(cls_pred, seg_pred2, cls_gt, seg_gt2))) < 1e-3, (
        float(total2), float(_ref(cls_pred, seg_pred2, cls_gt, seg_gt2)))

    print("KERNEL_OK")
</pallas_src>

<mosaic_0001>
module attributes {stable_mosaic.version = 11 : i64} {
  func.func @_uptask_loss_kernel(%arg0: i32, %arg1: i32, %arg2: memref<2x4xf32, #tpu.memory_space<vmem>>, %arg3: memref<2x4xf32, #tpu.memory_space<vmem>>, %arg4: memref<8x128xf32, #tpu.memory_space<vmem>>, %arg5: memref<8x128xf32, #tpu.memory_space<vmem>>, %arg6: memref<8x128xf32, #tpu.memory_space<vmem>>, %arg7: memref<1x1xf32, #tpu.memory_space<vmem>>, %arg8: memref<1x1xf32, #tpu.memory_space<vmem>>, %arg9: memref<1x1xf32, #tpu.memory_space<vmem>>, %arg10: memref<1x1xf32, #tpu.memory_space<vmem>>) attributes {dimension_semantics = [#tpu.dimension_semantics<parallel>, #tpu.dimension_semantics<arbitrary>], iteration_bounds = array<i64: 1, 1>, scalar_prefetch = 0 : i64, scratch_operands = 4 : i64, tpu.core_type = #tpu.core_type<tc>, window_params = [{pipeline_mode = #tpu.pipeline_mode<synchronous>, transform_indices = @transform_0, window_bounds = array<i64: 2, 4>}, {pipeline_mode = #tpu.pipeline_mode<synchronous>, transform_indices = @transform_1, window_bounds = array<i64: 2, 4>}, {transform_indices = @transform_2, window_bounds = array<i64: 8, 128>}, {transform_indices = @transform_3, window_bounds = array<i64: 8, 128>}, {transform_indices = @transform_4, window_bounds = array<i64: 8, 128>}]} {
    %c0_i32 = arith.constant 0 : i32
    %0 = arith.cmpi eq, %arg1, %c0_i32 : i32
    %1 = arith.extui %0 : i1 to i32
    %c0_i32_0 = arith.constant 0 : i32
    %2 = arith.cmpi ne, %1, %c0_i32_0 : i32
    scf.if %2 {
      %cst_30 = arith.constant 0.000000e+00 : f32
      %59 = vector.broadcast %cst_30 : f32 to vector<1x1xf32>
      %c0_31 = arith.constant 0 : index
      %c0_32 = arith.constant 0 : index
      %60 = vector.load %arg7[%c0_31, %c0_32] : memref<1x1xf32, #tpu.memory_space<vmem>>, vector<1x1xf32>
      tpu.vector_store %arg7[%c0_31, %c0_32], %59 {strides = array<i32>} : memref<1x1xf32, #tpu.memory_space<vmem>>, vector<1x1xf32>,
      %cst_33 = arith.constant 0.000000e+00 : f32
      %61 = vector.broadcast %cst_33 : f32 to vector<1x1xf32>
      %c0_34 = arith.constant 0 : index
      %c0_35 = arith.constant 0 : index
      %62 = vector.load %arg8[%c0_34, %c0_35] : memref<1x1xf32, #tpu.memory_space<vmem>>, vector<1x1xf32>
      tpu.vector_store %arg8[%c0_34, %c0_35], %61 {strides = array<i32>} : memref<1x1xf32, #tpu.memory_space<vmem>>, vector<1x1xf32>,
      %cst_36 = arith.constant 0.000000e+00 : f32
      %63 = vector.broadcast %cst_36 : f32 to vector<1x1xf32>
      %c0_37 = arith.constant 0 : index
      %c0_38 = arith.constant 0 : index
      %64 = vector.load %arg9[%c0_37, %c0_38] : memref<1x1xf32, #tpu.memory_space<vmem>>, vector<1x1xf32>
      tpu.vector_store %arg9[%c0_37, %c0_38], %63 {strides = array<i32>} : memref<1x1xf32, #tpu.memory_space<vmem>>, vector<1x1xf32>,
      %cst_39 = arith.constant 0.000000e+00 : f32
      %65 = vector.broadcast %cst_39 : f32 to vector<1x1xf32>
      %c0_40 = arith.constant 0 : index
      %c0_41 = arith.constant 0 : index
      %66 = vector.load %arg10[%c0_40, %c0_41] : memref<1x1xf32, #tpu.memory_space<vmem>>, vector<1x1xf32>
      tpu.vector_store %arg10[%c0_40, %c0_41], %65 {strides = array<i32>} : memref<1x1xf32, #tpu.memory_space<vmem>>, vector<1x1xf32>,
    } else {
    }
    %c0 = arith.constant 0 : index
    %c0_1 = arith.constant 0 : index
    %3 = vector.load %arg4[%c0, %c0_1] : memref<8x128xf32, #tpu.memory_space<vmem>>, vector<8x128xf32>
    %c0_2 = arith.constant 0 : index
    %c0_3 = arith.constant 0 : index
    %4 = vector.load %arg5[%c0_2, %c0_3] : memref<8x128xf32, #tpu.memory_space<vmem>>, vector<8x128xf32>
    %5 = math.absf %3 : vector<8x128xf32>
    %cst = arith.constant 0.000000e+00 : f32
    %6 = vector.broadcast %cst : f32 to vector<8x128xf32>
    %7 = arith.subf %6, %5 : vector<8x128xf32>
    %8 = math.exp %7 : vector<8x128xf32>
    %cst_4 = arith.constant 0.000000e+00 : f32
    %9 = vector.broadcast %cst_4 : f32 to vector<8x128xf32>
    %10 = arith.maximumf %3, %9 : vector<8x128xf32>
    %11 = arith.mulf %3, %4 : vector<8x128xf32>
    %12 = arith.subf %10, %11 : vector<8x128xf32>
    %13 = math.log1p %8 : vector<8x128xf32>
    %14 = arith.addf %12, %13 : vector<8x128xf32>
    %cst_5 = arith.constant 0.000000e+00 : f32
    %15 = vector.broadcast %cst_5 : f32 to vector<8x128xf32>
    %16 = arith.cmpf oge, %3, %15 : vector<8x128xf32>
    %cst_6 = arith.constant 1.000000e+00 : f32
    %17 = vector.broadcast %cst_6 : f32 to vector<8x128xf32>
    %18 = arith.select %16, %17, %8 : vector<8x128xi1>, vector<8x128xf32>
    %cst_7 = arith.constant 1.000000e+00 : f32
    %19 = vector.broadcast %cst_7 : f32 to vector<8x128xf32>
    %20 = arith.addf %19, %8 : vector<8x128xf32>
    %21 = arith.divf %18, %20 : vector<8x128xf32>
    %c0_8 = arith.constant 0 : index
    %c0_9 = arith.constant 0 : index
    %22 = vector.load %arg7[%c0_8, %c0_9] : memref<1x1xf32, #tpu.memory_space<vmem>>, vector<1x1xf32>
    %23 = vector.shape_cast %14 : vector<8x128xf32> to vector<1x8x128xf32>
    %cst_10 = arith.constant dense<0.000000e+00> : vector<1xf32>
    %24 = vector.multi_reduction <add>, %23, %cst_10 [1, 2] : vector<1x8x128xf32> to vector<1xf32>
    %25 = vector.shape_cast %24 : vector<1xf32> to vector<1x1x1xf32>
    %26 = vector.extract %25[0, 0, 0] : f32 from vector<1x1x1xf32>
    %27 = vector.broadcast %26 : f32 to vector<1x1xf32>
    %28 = arith.addf %22, %27 : vector<1x1xf32>
    %c0_11 = arith.constant 0 : index
    %c0_12 = arith.constant 0 : index
    %29 = vector.load %arg7[%c0_11, %c0_12] : memref<1x1xf32, #tpu.memory_space<vmem>>, vector<1x1xf32>
    tpu.vector_store %arg7[%c0_11, %c0_12], %28 {strides = array<i32>} : memref<1x1xf32, #tpu.memory_space<vmem>>, vector<1x1xf32>,
    %c0_13 = arith.constant 0 : index
    %c0_14 = arith.constant 0 : index
    %30 = vector.load %arg8[%c0_13, %c0_14] : memref<1x1xf32, #tpu.memory_space<vmem>>, vector<1x1xf32>
    %31 = arith.mulf %21, %4 : vector<8x128xf32>
    %32 = vector.shape_cast %31 : vector<8x128xf32> to vector<1x8x128xf32>
    %cst_15 = arith.constant dense<0.000000e+00> : vector<1xf32>
    %33 = vector.multi_reduction <add>, %32, %cst_15 [1, 2] : vector<1x8x128xf32> to vector<1xf32>
    %34 = vector.shape_cast %33 : vector<1xf32> to vector<1x1x1xf32>
    %35 = vector.extract %34[0, 0, 0] : f32 from vector<1x1x1xf32>
    %36 = vector.broadcast %35 : f32 to vector<1x1xf32>
    %37 = arith.addf %30, %36 : vector<1x1xf32>
    %c0_16 = arith.constant 0 : index
    %c0_17 = arith.constant 0 : index
    %38 = vector.load %arg8[%c0_16, %c0_17] : memref<1x1xf32, #tpu.memory_space<vmem>>, vector<1x1xf32>
    tpu.vector_store %arg8[%c0_16, %c0_17], %37 {strides = array<i32>} : memref<1x1xf32, #tpu.memory_space<vmem>>, vector<1x1xf32>,
    %c0_18 = arith.constant 0 : index
    %c0_19 = arith.constant 0 : index
    %39 = vector.load %arg9[%c0_18, %c0_19] : memref<1x1xf32, #tpu.memory_space<vmem>>, vector<1x1xf32>
    %40 = arith.addf %21, %4 : vector<8x128xf32>
    %41 = vector.shape_cast %40 : vector<8x128xf32> to vector<1x8x128xf32>
    %cst_20 = arith.constant dense<0.000000e+00> : vector<1xf32>
    %42 = vector.multi_reduction <add>, %41, %cst_20 [1, 2] : vector<1x8x128xf32> to vector<1xf32>
    %43 = vector.shape_cast %42 : vector<1xf32> to vector<1x1x1xf32>
    %44 = vector.extract %43[0, 0, 0] : f32 from vector<1x1x1xf32>
    %45 = vector.broadcast %44 : f32 to vector<1x1xf32>
    %46 = arith.addf %39, %45 : vector<1x1xf32>
    %c0_21 = arith.constant 0 : index
    %c0_22 = arith.constant 0 : index
    %47 = vector.load %arg9[%c0_21, %c0_22] : memref<1x1xf32, #tpu.memory_space<vmem>>, vector<1x1xf32>
    tpu.vector_store %arg9[%c0_21, %c0_22], %46 {strides = array<i32>} : memref<1x1xf32, #tpu.memory_space<vmem>>, vector<1x1xf32>,
    %c0_23 = arith.constant 0 : index
    %c0_24 = arith.constant 0 : index
    %48 = vector.load %arg10[%c0_23, %c0_24] : memref<1x1xf32, #tpu.memory_space<vmem>>, vector<1x1xf32>
    %49 = vector.shape_cast %4 : vector<8x128xf32> to vector<1x8x128xf32>
    %cst_25 = arith.constant dense<0.000000e+00> : vector<1xf32>
    %50 = vector.multi_reduction <add>, %49, %cst_25 [1, 2] : vector<1x8x128xf32> to vector<1xf32>
    %51 = vector.shape_cast %50 : vector<1xf32> to vector<1x1x1xf32>
    %52 = vector.extract %51[0, 0, 0] : f32 from vector<1x1x1xf32>
    %53 = vector.broadcast %52 : f32 to vector<1x1xf32>
    %54 = arith.addf %48, %53 : vector<1x1xf32>
    %c0_26 = arith.constant 0 : index
    %c0_27 = arith.constant 0 : index
    %55 = vector.load %arg10[%c0_26, %c0_27] : memref<1x1xf32, #tpu.memory_space<vmem>>, vector<1x1xf32>
    tpu.vector_store %arg10[%c0_26, %c0_27], %54 {strides = array<i32>} : memref<1x1xf32, #tpu.memory_space<vmem>>, vector<1x1xf32>,
    %c0_i32_28 = arith.constant 0 : i32
    %56 = arith.cmpi eq, %arg1, %c0_i32_28 : i32
    %57 = arith.extui %56 : i1 to i32
    %c0_i32_29 = arith.constant 0 : i32
    %58 = arith.cmpi ne, %57, %c0_i32_29 : i32
    scf.if %58 {
      %c0_30 = arith.constant 0 : index
      %c0_31 = arith.constant 0 : index
      %59 = vector.load %arg2[%c0_30, %c0_31] : memref<2x4xf32, #tpu.memory_space<vmem>>, vector<2x4xf32>
      %c0_32 = arith.constant 0 : index
      %c0_33 = arith.constant 0 : index
      %60 = vector.load %arg3[%c0_32, %c0_33] : memref<2x4xf32, #tpu.memory_space<vmem>>, vector<2x4xf32>
      %61 = math.absf %59 : vector<2x4xf32>
      %cst_34 = arith.constant 0.000000e+00 : f32
      %62 = vector.broadcast %cst_34 : f32 to vector<2x4xf32>
      %63 = arith.subf %62, %61 : vector<2x4xf32>
      %64 = math.exp %63 : vector<2x4xf32>
      %cst_35 = arith.constant 0.000000e+00 : f32
      %65 = vector.broadcast %cst_35 : f32 to vector<2x4xf32>
      %66 = arith.maximumf %59, %65 : vector<2x4xf32>
      %67 = arith.mulf %59, %60 : vector<2x4xf32>
      %68 = arith.subf %66, %67 : vector<2x4xf32>
      %69 = math.log1p %64 : vector<2x4xf32>
      %70 = arith.addf %68, %69 : vector<2x4xf32>
      %71 = vector.shape_cast %70 : vector<2x4xf32> to vector<1x2x4xf32>
      %cst_36 = arith.constant dense<0.000000e+00> : vector<1xf32>
      %72 = vector.multi_reduction <add>, %71, %cst_36 [1, 2] : vector<1x2x4xf32> to vector<1xf32>
      %73 = vector.shape_cast %72 : vector<1xf32> to vector<1x1x1xf32>
      %74 = vector.extract %73[0, 0, 0] : f32 from vector<1x1x1xf32>
      %75 = tpu.iota {dimensions = array<i32: 1>} : vector<8x128xi32>
      %c0_i32_37 = arith.constant 0 : i32
      %76 = vector.broadcast %c0_i32_37 : i32 to vector<8x128xi32>
      %77 = arith.cmpi eq, %75, %76 : vector<8x128xi32>
      %c0_38 = arith.constant 0 : index
      %c0_39 = arith.constant 0 : index
      %78 = vector.load %arg7[%c0_38, %c0_39] : memref<1x1xf32, #tpu.memory_space<vmem>>, vector<1x1xf32>
      %c1_i32 = arith.constant 1 : i32
      %79 = vector.broadcast %c1_i32 : i32 to vector<8x128xi32>
      %80 = arith.cmpi eq, %75, %79 : vector<8x128xi32>
      %c0_40 = arith.constant 0 : index
      %c0_41 = arith.constant 0 : index
      %81 = vector.load %arg8[%c0_40, %c0_41] : memref<1x1xf32, #tpu.memory_space<vmem>>, vector<1x1xf32>
      %c2_i32 = arith.constant 2 : i32
      %82 = vector.broadcast %c2_i32 : i32 to vector<8x128xi32>
      %83 = arith.cmpi eq, %75, %82 : vector<8x128xi32>
      %c0_42 = arith.constant 0 : index
      %c0_43 = arith.constant 0 : index
      %84 = vector.load %arg9[%c0_42, %c0_43] : memref<1x1xf32, #tpu.memory_space<vmem>>, vector<1x1xf32>
      %c3_i32 = arith.constant 3 : i32
      %85 = vector.broadcast %c3_i32 : i32 to vector<8x128xi32>
      %86 = arith.cmpi eq, %75, %85 : vector<8x128xi32>
      %c0_44 = arith.constant 0 : index
      %c0_45 = arith.constant 0 : index
      %87 = vector.load %arg10[%c0_44, %c0_45] : memref<1x1xf32, #tpu.memory_space<vmem>>, vector<1x1xf32>
      %c4_i32 = arith.constant 4 : i32
      %88 = vector.broadcast %c4_i32 : i32 to vector<8x128xi32>
      %89 = arith.cmpi eq, %75, %88 : vector<8x128xi32>
      %cst_46 = arith.constant 0.000000e+00 : f32
      %90 = vector.broadcast %74 : f32 to vector<8x128xf32>
      %91 = vector.broadcast %cst_46 : f32 to vector<8x128xf32>
      %92 = arith.select %89, %90, %91 : vector<8x128xi1>, vector<8x128xf32>
      %93 = vector.shape_cast %87 : vector<1x1xf32> to vector<1x1xf32>
      %94 = vector.broadcast %93 : vector<1x1xf32> to vector<8x128xf32>
      %95 = arith.select %86, %94, %92 : vector<8x128xi1>, vector<8x128xf32>
      %96 = vector.shape_cast %84 : vector<1x1xf32> to vector<1x1xf32>
      %97 = vector.broadcast %96 : vector<1x1xf32> to vector<8x128xf32>
      %98 = arith.select %83, %97, %95 : vector<8x128xi1>, vector<8x128xf32>
      %99 = vector.shape_cast %81 : vector<1x1xf32> to vector<1x1xf32>
      %100 = vector.broadcast %99 : vector<1x1xf32> to vector<8x128xf32>
      %101 = arith.select %80, %100, %98 : vector<8x128xi1>, vector<8x128xf32>
      %102 = vector.shape_cast %78 : vector<1x1xf32> to vector<1x1xf32>
      %103 = vector.broadcast %102 : vector<1x1xf32> to vector<8x128xf32>
      %104 = arith.select %77, %103, %101 : vector<8x128xi1>, vector<8x128xf32>
      %c0_47 = arith.constant 0 : index
      %c0_48 = arith.constant 0 : index
      %105 = vector.load %arg6[%c0_47, %c0_48] : memref<8x128xf32, #tpu.memory_space<vmem>>, vector<8x128xf32>
      tpu.vector_store %arg6[%c0_47, %c0_48], %104 {strides = array<i32>} : memref<8x128xf32, #tpu.memory_space<vmem>>, vector<8x128xf32>,
    } else {
    }
    return
  }
  func.func @transform_0(%arg0: i32, %arg1: i32) -> (i32, i32) {
    %c0_i32 = arith.constant 0 : i32
    %c0_i32_0 = arith.constant 0 : i32
    %c0_i32_1 = arith.constant 0 : i32
    return %c0_i32, %c0_i32_0 : i32, i32
  }
  func.func @transform_1(%arg0: i32, %arg1: i32) -> (i32, i32) {
    %c0_i32 = arith.constant 0 : i32
    %c0_i32_0 = arith.constant 0 : i32
    %c0_i32_1 = arith.constant 0 : i32
    return %c0_i32, %c0_i32_0 : i32, i32
  }
  func.func @transform_2(%arg0: i32, %arg1: i32) -> (i32, i32) {
    %c1_i32 = arith.constant 1 : i32
    %0 = arith.muli %arg0, %c1_i32 : i32
    %1 = arith.addi %0, %arg1 : i32
    %c0_i32 = arith.constant 0 : i32
    %c0_i32_0 = arith.constant 0 : i32
    return %1, %c0_i32 : i32, i32
  }
  func.func @transform_3(%arg0: i32, %arg1: i32) -> (i32, i32) {
    %c1_i32 = arith.constant 1 : i32
    %0 = arith.muli %arg0, %c1_i32 : i32
    %1 = arith.addi %0, %arg1 : i32
    %c0_i32 = arith.constant 0 : i32
    %c0_i32_0 = arith.constant 0 : i32
    return %1, %c0_i32 : i32, i32
  }
  func.func @transform_4(%arg0: i32, %arg1: i32) -> (i32, i32) {
    %c0_i32 = arith.constant 0 : i32
    %c0_i32_0 = arith.constant 0 : i32
    return %arg0, %c0_i32 : i32, i32
  }
}

</mosaic_0001>

<bundles_post_ra>
// kernel: tpu_custom_call.1
= control target key start
LH: loop header
LB: loop body
LE: loop exit
PB: predicated region body
PF: predicated region fallthrough
CT: control target
= control target key end

     0   :  { %9 = vsyncpa [#allocation7], 0  ;;  %s443_s0 = inlined_call_operand.hbm [shape: f32[2,4], index: 0, kind: input, shape index: {}]   ;;  %s444_s1 = inlined_call_operand.vmem [shape: f32[2,4], index: 1, kind: input, shape index: {}]   ;;  %s445_s2 = inlined_call_operand.hbm [shape: f32[8,128], index: 2, kind: input, shape index: {}]   ;;  %s446_s3 = inlined_call_operand.vmem [shape: f32[8,128], index: 3, kind: input, shape index: {}]   ;;  %s447_s4 = inlined_call_operand.hbm [shape: f32[8,128], index: 4, kind: output, shape index: {}]  }
   0x1   :  { %10 = vsyncpa [#allocation10], 0 }
   0x2   :  { %11 = vsyncpa [#allocation8], 0  ;;  %s363_s15 = smov [#allocation6]   ;;  %s364_s17 = smov [#allocation9]  }
   0x3   :  { %s18_s16 = sshll.u32 %s363_s15, 4  ;;  %s33_s18 = sshll.u32 %s364_s17, 4  ;;  %s19_s16 = int_to_ptr.vmem [resolvable:$true] %s18_s16  ;;  %s34_s18 = int_to_ptr.vmem [resolvable:$true] %s33_s18 }
   0x4   :  { %s291_s21 = scalar_lea.hbm %s443_s0, 32 }
   0x5   :  { %p292_p0 = scmp.ne.s32.totalorder %s443_s0, %s291_s21  ;;  %p295_p1 = scmp.lt.u32.totalorder %s291_s21, %s443_s0 }
   0x7   :  { %p297_p2 = pnand %p295_p1, %p292_p0 }
   0x9   :  { %300 = shalt.err (!%p297_p2)
}
   0xa   :  { %s301_s26 = scalar_lea.vmem %s19_s16, 32  ;;  %p306_p4 = scmp.lt.s32.totalorder %s19_s16, %s19_s16 }
   0xb   :  { %p302_p3 = scmp.ne.s32.totalorder %s19_s16, %s301_s26  ;;  %p307_p5 = scmp.lt.s32.totalorder %s301_s26, %s301_s26 }
   0xd   :  { %p308_p6 = por %p307_p5, %p306_p4 }
   0xf   :  { %p309_p7 = pnand %p308_p6, %p302_p3 }
  0x11   :  { %312 = shalt.err (!%p309_p7)
}
  0x12   :  { %21 = dma.hbm_to_vmem [thread:$0]  %s443_s0, 32, %s19_s16, [#allocation7]  }
  0x13   :  { %s313_s5 = scalar_lea.hbm %s445_s2, 128 }
  0x14   :  { %p314_p8 = scmp.ne.s32.totalorder %s445_s2, %s313_s5  ;;  %p317_p9 = scmp.lt.u32.totalorder %s313_s5, %s445_s2 }
  0x16   :  { %p319_p10 = pnand %p317_p9, %p314_p8 }
  0x18   :  { %322 = shalt.err (!%p319_p10)
}
  0x19   :  { %s323_s10 = scalar_lea.vmem %s34_s18, 128  ;;  %p328_p12 = scmp.lt.s32.totalorder %s34_s18, %s34_s18 }
  0x1a   :  { %p324_p11 = scmp.ne.s32.totalorder %s34_s18, %s323_s10  ;;  %p329_p13 = scmp.lt.s32.totalorder %s323_s10, %s323_s10 }
  0x1c   :  { %p330_p0 = por %p329_p13, %p328_p12 }
  0x1e   :  { %p331_p1 = pnand %p330_p0, %p324_p11 }
  0x20   :  { %334 = shalt.err (!%p331_p1)
}
  0x21   :  { %36 = dma.hbm_to_vmem [thread:$0]  %s445_s2, 128, %s34_s18, [#allocation10]  }
  0x22   :  { %357 = dma.done.wait [#allocation7], 32  }
  0x23   :  { %358 = vsyncadd [#allocation7], 4294967264 }
  0x24   :  { %359 = dma.done.wait [#allocation10], 128  }
  0x25   :  { %360 = vsyncadd [#allocation10], 4294967168  ;;  %v72_v0 = vld [vmem:[#allocation9] sm:$0xff]  ;;  %v154_v4 = vld [vmem:[#allocation6] sm:$0x3]  ;;  %vm173_vm3 = vcmask 25600  }
  0x26   :  { %v74_v1 = vand.u32 2147483647, %v72_v0  ;;  %v156_v5 = vand.u32 2147483647, %v154_v4  ;;  %v73_v11 = vld [vmem:[%s446_s3] sm:$0xff]  ;;  %vm91_vm0 = vcmp.ge.f32.partialorder %v72_v0, 0.0 }
  0x27   :  { %v78_v13 = vmax.f32 %v72_v0, 0.0  ;;  %v79_v14 = vmul.f32 %v73_v11, %v72_v0  ;;  %v155_v30 = vld [vmem:[%s444_s1] sm:$0x3]  ;;  %v160_v33 = vmax.f32 %v154_v4, 0.0  ;;  %vm67_vm4 = vcmask 0   ;;  %s367_s18 = smov [#allocation11]  }
  0x28   :  { %v75_v2 = vsub.f32 0.0, %v74_v1  ;;  %v157_v6 = vsub.f32 0.0, %v156_v5  ;;  %v161_v34 = vmul.f32 %v155_v30, %v154_v4  ;;  %v365_v42 = vmov 0.0   ;;  %s244_s19 = sshll.u32 %s367_s18, 4  ;;  %s245_s19 = int_to_ptr.vmem [resolvable:$true] %s244_s19 }
  0x29   :  { %v80_v23 = vsub.f32 %v78_v13, %v79_v14  ;;  %68 = vst.msk [vmem:[#allocation2] sm:$0x1] %vm67_vm4, %v365_v42  ;;  %69 = vst.msk [vmem:[#allocation3] sm:$0x1] %vm67_vm4, %v365_v42  ;;  %v366_v43 = vmov 0   ;;  %s335_s20 = scalar_lea.vmem %s245_s19, 128  ;;  %p340_p3 = scmp.lt.s32.totalorder %s245_s19, %s245_s19 }
  0x2a   :  { %v76_v3 = vmul.f32 1.442695, %v75_v2  ;;  %v158_v8 = vmul.f32 1.442695, %v157_v6  ;;  %v162_v38 = vsub.f32 %v160_v33, %v161_v34  ;;  %70 = vst.msk [vmem:[#allocation4] sm:$0x1] %vm67_vm4, %v365_v42  ;;  %280 = vset.pattern.permute.xlu0 %v366_v43  ;;  %279 = vset.pattern.permute.xlu1 %v366_v43  ;;  %p336_p2 = scmp.ne.s32.totalorder %s245_s19, %s335_s20  ;;  %p341_p4 = scmp.lt.s32.totalorder %s335_s20, %s335_s20 }
  0x2b   :  { %71 = vst.msk [vmem:[#allocation5] sm:$0x1] %vm67_vm4, %v365_v42 }
  0x2c   :  { %281 = vpow2.f32 %v76_v3  ;;  %p342_p5 = por %p341_p4, %p340_p3 }
  0x2d   :  { %283 = vpow2.f32 %v158_v8 }
  0x2e   :  { %p343_p6 = pnand %p342_p5, %p336_p2 }
  0x36   :  { %v282_v7 = vpop.eup %281 }
  0x37   :  { %v81_v9 = vadd.f32 1.0, %v282_v7  ;;  %v84_v10 = vmul.f32 -0.5, %v282_v7  ;;  %v87_v15 = vand.u32 2147483647, %v282_v7  ;;  %v92_v16 = vsel %vm91_vm0, 1.0, %v282_v7  ;;  %v284_v17 = vpop.eup %283 }
  0x38   :  { %v163_v20 = vadd.f32 1.0, %v284_v17  ;;  %v166_v29 = vmul.f32 -0.5, %v284_v17  ;;  %v169_v35 = vand.u32 2147483647, %v284_v17 }
  0x39   :  { %285 = vrcp.f32 %v81_v9  ;;  %v85_v12 = vadd.f32 1.0, %v84_v10  ;;  %vm88_vm1 = vcmp.lt.f32.partialorder %v87_v15, 0.0004427343  ;;  %v96_v15 = vld [vmem:[#allocation2] sm:$0x1] }
  0x3a   :  { %287 = vlog2.f32 %v81_v9  ;;  %v167_v31 = vadd.f32 1.0, %v166_v29  ;;  %vm170_vm2 = vcmp.lt.f32.partialorder %v169_v35, 0.0004427343 }
  0x3b   :  { %v86_v19 = vmul.f32 %v282_v7, %v85_v12  ;;  %289 = vlog2.f32 %v163_v20 }
  0x3c   :  { %v168_v37 = vmul.f32 %v284_v17, %v167_v31  ;;  %v184_v31 = vlaneseq }
  0x43   :  { %v286_v18 = vpop.eup %285 }
  0x44   :  { %v288_v21 = vpop.eup %287  ;;  %v95_v22 = vmul.f32 %v286_v18, %v92_v16  ;;  %v110_v18 = vld [vmem:[#allocation3] sm:$0x1] }
  0x45   :  { %v83_v24 = vmul.f32 0.6931472, %v288_v21  ;;  %v290_v32 = vpop.eup %289  ;;  %v138_v21 = vld [vmem:[#allocation5] sm:$0x1] }
  0x46   :  { %v125_v25 = vadd.f32 %v95_v22, %v73_v11  ;;  %v111_v28 = vmul.f32 %v95_v22, %v73_v11  ;;  %v165_v36 = vmul.f32 0.6931472, %v290_v32  ;;  %v185_v32 = vand.u32 127, %v184_v31 }
  0x47   :  { %v89_v26 = vsel %vm88_vm1, %v86_v19, %v83_v24  ;;  %v124_v19 = vld [vmem:[#allocation4] sm:$0x1] }
  0x48   :  { %126 = vadd.xlane.f32.xlu1 %v125_v25  ;;  %v90_v27 = vadd.f32 %v89_v26, %v80_v23  ;;  %v171_v39 = vsel %vm170_vm2, %v168_v37, %v165_v36  ;;  %vm194_vm5 = vcmp.eq.s32.totalorder %v185_v32, 4  ;;  %vm192_vm6 = vcmp.eq.s32.totalorder %v185_v32, 3 }
  0x49   :  { %v172_v40 = vadd.f32 %v171_v39, %v162_v38  ;;  %vm190_vm7 = vcmp.eq.s32.totalorder %v185_v32, 2  ;;  %vm188_vm8 = vcmp.eq.s32.totalorder %v185_v32, 1  ;;  %vm186_vm9 = vcmp.eq.s32.totalorder %v185_v32, 0 }
  0x4a   :  { %97 = vadd.xlane.f32.xlu0 %v90_v27 }
  0x4b   :  { %v174_v41 = vsel %vm173_vm3, %v172_v40, 0.0 }
  0x4c   :  { %139 = vadd.xlane.f32.xlu1 %v73_v11 }
  0x4e   :  { %112 = vadd.xlane.f32.xlu0 %v111_v28 }
  0x52   :  { %175 = vadd.xlane.f32.xlu0 %v174_v41 }
  0xd5   :  { %v127_v44 = vpop.xlane.xlu1 %126 }
  0xd6   :  { %v128_v45 = vrot.slane %v127_v44, 4 }
  0xd7   :  { %v98_v46 = vpop.xlane.xlu0 %97 }
  0xd8   :  { %v129_v47 = vadd.f32 %v128_v45, %v127_v44  ;;  %v99_v48 = vrot.slane %v98_v46, 4 }
  0xd9   :  { %v140_v49 = vpop.xlane.xlu1 %139 }
  0xda   :  { %v100_v50 = vadd.f32 %v99_v48, %v98_v46  ;;  %v141_v51 = vrot.slane %v140_v49, 4  ;;  %v130_v52 = vrot.slane %v129_v47, 2 }
  0xdb   :  { %v113_v53 = vpop.xlane.xlu0 %112 }
  0xdc   :  { %v101_v54 = vrot.slane %v100_v50, 2  ;;  %v142_v55 = vadd.f32 %v141_v51, %v140_v49  ;;  %v114_v56 = vrot.slane %v113_v53, 4  ;;  %v131_v60 = vadd.f32 %v130_v52, %v129_v47 }
  0xde   :  { %v143_v57 = vrot.slane %v142_v55, 2  ;;  %v115_v58 = vadd.f32 %v114_v56, %v113_v53  ;;  %v102_v59 = vadd.f32 %v101_v54, %v100_v50  ;;  %v132_v3 = vrot.slane %v131_v60, 1 }
  0xdf   :  { %v176_v4 = vpop.xlane.xlu0 %175 }
  0xe0   :  { %v116_v61 = vrot.slane %v115_v58, 2  ;;  %v103_v62 = vrot.slane %v102_v59, 1  ;;  %v144_v63 = vadd.f32 %v143_v57, %v142_v55  ;;  %v177_v6 = vrot.slane %v176_v4, 4 }
  0xe1   :  { %v133_v10 = vadd.f32 %v132_v3, %v131_v60 }
  0xe2   :  { %v104_v0 = vadd.f32 %v103_v62, %v102_v59  ;;  %v117_v1 = vadd.f32 %v116_v61, %v115_v58  ;;  %v145_v2 = vrot.slane %v144_v63, 1  ;;  %v178_v9 = vadd.f32 %v177_v6, %v176_v4 }
  0xe4   :  { %264 = vpush %v104_v0  ;;  %v118_v5 = vrot.slane %v117_v1, 1  ;;  %v146_v8 = vadd.f32 %v145_v2, %v144_v63  ;;  %v179_v11 = vrot.slane %v178_v9, 2 }
  0xe6   :  { %v119_v7 = vadd.f32 %v118_v5, %v117_v1  ;;  %v180_v12 = vadd.f32 %v179_v11, %v178_v9 }
  0xe8   :  { %266 = vpush %v119_v7  ;;  %v181_v13 = vrot.slane %v180_v12, 1 }
  0xe9   :  { %268 = vpush %v133_v10 }
  0xea   :  { %270 = vpush %v146_v8  ;;  %v182_v14 = vadd.f32 %v181_v13, %v180_v12 }
  0xec   :  { %272 = vpush %v182_v14 }
 0x115   :  { %s265_s1 = spop %264 }
 0x116   :  { %v106_v16 = vstv %s265_s1 }
 0x117   :  { %v107_v17 = vadd.f32 %v106_v16, %v96_v15 }
 0x119   :  { %109 = vst.msk [vmem:[#allocation2] sm:$0x1] %vm67_vm4, %v107_v17  ;;  %s267_s14 = spop %266 }
 0x11a   :  { %v121_v20 = vstv %s267_s14  ;;  %s269_s15 = spop %268 }
 0x11b   :  { %v122_v22 = vadd.f32 %v121_v20, %v110_v18  ;;  %v135_v23 = vstv %s269_s15  ;;  %s271_s16 = spop %270 }
 0x11c   :  { %v136_v24 = vadd.f32 %v135_v23, %v124_v19  ;;  %v148_v25 = vstv %s271_s16 }
 0x11d   :  { %123 = vst.msk [vmem:[#allocation3] sm:$0x1] %vm67_vm4, %v122_v22  ;;  %v149_v26 = vadd.f32 %v148_v25, %v138_v21  ;;  %s273_s17 = spop %272 }
 0x11e   :  { %137 = vst.msk [vmem:[#allocation4] sm:$0x1] %vm67_vm4, %v136_v24  ;;  %v195_v33 = vstv %s273_s17 }
 0x11f   :  { %150 = vst.msk [vmem:[#allocation5] sm:$0x1] %vm67_vm4, %v149_v26  ;;  %v196_v35 = vsel %vm194_vm5, %v195_v33, 0.0 }
 0x120   :  { %v263_v30 = vld [vmem:[#allocation2] ss:$0 sm:$0xff] }
 0x124   :  { %v262_v29 = vld [vmem:[#allocation3] ss:$0 sm:$0xff] }
 0x125   :  { %v261_v27 = vld [vmem:[#allocation4] ss:$0 sm:$0xff] }
 0x126   :  { %v260_v28 = vld [vmem:[#allocation5] ss:$0 sm:$0xff]  ;;  %213 = vperm.xlu0 %280, %v261_v27  }
 0x127   :  { %203 = vperm.xlu1 %279, %v260_v28  }
 0x12b   :  { %223 = vperm.xlu1 %279, %v262_v29  }
 0x12f   :  { %233 = vperm.xlu1 %279, %v263_v30  }
 0x1a5   :  { %v214_v37 = vpop.permute.xlu0 %213 }
 0x1a6   :  { %v204_v34 = vpop.permute.xlu1 %203 }
 0x1a7   :  { %v206_v36 = vsel %vm192_vm6, %v204_v34, %v196_v35 }
 0x1a8   :  { %v216_v39 = vsel %vm190_vm7, %v214_v37, %v206_v36 }
 0x1aa   :  { %v224_v38 = vpop.permute.xlu1 %223 }
 0x1ab   :  { %v226_v40 = vsel %vm188_vm8, %v224_v38, %v216_v39 }
 0x1ae   :  { %v234_v41 = vpop.permute.xlu1 %233 }
 0x1af   :  { %v236_v42 = vsel %vm186_vm9, %v234_v41, %v226_v40 }
 0x1b0   :  { %237 = vst [vmem:[#allocation11] sm:$0xff] %v236_v42 }
 0x1b1   :  { %346 = shalt.err (!%p343_p6)
}
 0x1b2   :  { %s347_s23 = scalar_lea.hbm %s447_s4, 128 }
 0x1b3   :  { %p348_p7 = scmp.ne.s32.totalorder %s447_s4, %s347_s23  ;;  %p351_p8 = scmp.lt.u32.totalorder %s347_s23, %s447_s4 }
 0x1b5   :  { %p353_p9 = pnand %p351_p8, %p348_p7 }
 0x1b7   :  { %356 = shalt.err (!%p353_p9)
}
 0x1b8   :  { %247 = dma.vmem_to_hbm [thread:$0]  %s245_s19, 128, %s447_s4, [#allocation8]  }
 0x1b9   :  { %361 = dma.done.wait [#allocation8], 128  }
 0x1ba   :  { %362 = vsyncadd [#allocation8], 4294967168 }
 0x1bb   :  { %251 = vsyncpa [#allocation7], 1 }
 0x1bc   :  { %252 = vsyncpa [#allocation10], 1 }
 0x1bd   :  { %253 = vsyncpa [#allocation8], 1 }

</bundles_post_ra>
